<compile_context>
chip_gen: v7x
topology: tpu7x:2x2x1
jax: 0.10.0
libtpu: 0.0.40
codegen_flags: <defaults>
</compile_context>

<pallas_src>
import jax
import jax.numpy as jnp
from jax.experimental import pallas as pl
from jax.experimental.pallas import tpu as pltpu

HIDDEN = 50     # hidden_size=50 hardcoded in the PyTorch module
LANE = 128      # per-gate padded width (TPU lane count)
NGATES = 6      # i, g, o  x  {fwd, bwd}


def _round_up(n, m):
    return ((n + m - 1) // m) * m


# ----------------------------------------------------------------------------
# Kernel
# ----------------------------------------------------------------------------
def _encoder_kernel(x_ref, wg_ref, bg_ref, wdf_ref, wdb_ref, bd_ref, o_ref):
    # One fused MXU matmul for both directions, i/g/o gates only (f-gate dead).
    # gates: (TB, 6*128) f32, each gate occupies its own aligned 128-lane block.
    gates = jnp.dot(x_ref[...], wg_ref[...],
                    preferred_element_type=jnp.float32) + bg_ref[...]

    def lstm_h(base):
        i_g = jax.nn.sigmoid(gates[:, base + 0 * LANE: base + 1 * LANE])
        g_g = jnp.tanh(gates[:, base + 1 * LANE: base + 2 * LANE])
        o_g = jax.nn.sigmoid(gates[:, base + 2 * LANE: base + 3 * LANE])
        # Padded lanes: sigmoid(0)*tanh(sigmoid(0)*tanh(0)) == 0, and the
        # matching dense-weight rows are zero anyway.
        return o_g * jnp.tanh(i_g * g_g)                    # (TB, 128) f32

    h_f = lstm_h(0)
    h_b = lstm_h(3 * LANE)

    # Split dense: out = h_f @ Wd_f + h_b @ Wd_b + b  (no concat / relayout).
    acc = jnp.dot(h_f.astype(wdf_ref.dtype), wdf_ref[...],
                  preferred_element_type=jnp.float32)
    acc = acc + jnp.dot(h_b.astype(wdb_ref.dtype), wdb_ref[...],
                        preferred_element_type=jnp.float32)
    o_ref[...] = acc + bd_ref[...]


# ----------------------------------------------------------------------------
# Parameter packing (PyTorch layout -> lane-aligned kernel layout)
# ----------------------------------------------------------------------------
def pack_params(raw):
    """raw params use PyTorch shapes:
       W_ih_{f,b}: (4H, S); b_ih_{f,b}, b_hh_{f,b}: (4H,);
       W_dense: (L, 2H); b_dense: (L,)."""
    (w_ih_f, b_ih_f, b_hh_f, w_ih_b, b_ih_b, b_hh_b, w_d, b_d) = raw
    H = HIDDEN
    L = w_d.shape[0]
    LP = _round_up(L, LANE)

    def gate_cols(w_ih, b_sum):
        ws, bs = [], []
        for g_idx in (0, 2, 3):                       # keep i, g, o (drop f)
            wg = w_ih[g_idx * H:(g_idx + 1) * H, :].T           # (S, H)
            ws.append(jnp.pad(wg, ((0, 0), (0, LANE - H))))     # (S, 128)
            bg = b_sum[g_idx * H:(g_idx + 1) * H]
            bs.append(jnp.pad(bg, (0, LANE - H)))
        return jnp.concatenate(ws, axis=1), jnp.concatenate(bs)

    wf, bf = gate_cols(w_ih_f, b_ih_f + b_hh_f)
    wb, bb = gate_cols(w_ih_b, b_ih_b + b_hh_b)
    w_gates = jnp.concatenate([wf, wb], axis=1)       # (S, 6*128)
    b_gates = jnp.concatenate([bf, bb])[None, :]      # (1, 6*128)

    # Dense split per direction, zero-padded rows H->128 and cols L->LP.
    wd_f = jnp.pad(w_d[:, :H].T, ((0, LANE - H), (0, LP - L)))  # (128, LP)
    wd_b = jnp.pad(w_d[:, H:].T, ((0, LANE - H), (0, LP - L)))  # (128, LP)
    bd = jnp.pad(b_d, (0, LP - L))[None, :]                     # (1, LP)
    return w_gates, b_gates, wd_f, wd_b, bd


# ----------------------------------------------------------------------------
# Wrapper
# ----------------------------------------------------------------------------
def encoder_forward(x, packed, *, signal_shape, latent_dim,
                    compute_dtype=jnp.bfloat16, block_rows=1024):
    """x: any shape whose total size is divisible by signal_shape
       (matches x.view(1, -1, S).float()). Returns (1, B, latent_dim) f32."""
    w_gates, b_gates, wd_f, wd_b, bd = packed
    S = signal_shape
    L = latent_dim
    LP = bd.shape[1]
    G = w_gates.shape[1]

    x2d = jnp.reshape(x, (-1, S)).astype(jnp.float32)   # (B, S)
    B = x2d.shape[0]

    # Batch tile: multiple of 8 sublanes, capped so double-buffered x/out tiles
    # stay well inside the 32 MiB scoped-VMEM budget (safe for v7x's 64 MiB).
    TB = _round_up(min(B, block_rows), 8)
    Bp = _round_up(B, TB)
    if Bp != B:
        x2d = jnp.pad(x2d, ((0, Bp - B), (0, 0)))

    xk = x2d.astype(compute_dtype)
    wgk = w_gates.astype(compute_dtype)
    wdfk = wd_f.astype(compute_dtype)
    wdbk = wd_b.astype(compute_dtype)
    bgk = b_gates.astype(jnp.float32)   # biases stay f32 (added to f32 acc)
    bdk = bd.astype(jnp.float32)

    out = pl.pallas_call(
        _encoder_kernel,
        out_shape=jax.ShapeDtypeStruct((Bp, LP), jnp.float32),
        grid_spec=pltpu.PrefetchScalarGridSpec(
            num_scalar_prefetch=0,
            grid=(Bp // TB,),
            in_specs=[
                pl.BlockSpec((TB, S), lambda i: (i, 0)),       # x tile streams
                pl.BlockSpec((S, G), lambda i: (0, 0)),        # weights resident
                pl.BlockSpec((1, G), lambda i: (0, 0)),
                pl.BlockSpec((LANE, LP), lambda i: (0, 0)),
                pl.BlockSpec((LANE, LP), lambda i: (0, 0)),
                pl.BlockSpec((1, LP), lambda i: (0, 0)),
            ],
            out_specs=pl.BlockSpec((TB, LP), lambda i: (i, 0)),
        ),
        compiler_params=pltpu.CompilerParams(
            dimension_semantics=("parallel",),        # megacore sharding on v7x
            vmem_limit_bytes=32 * 1024 * 1024,
        ),
    )(xk, wgk, bgk, wdfk, wdbk, bdk)

    return out[:B, :L][None, :, :]   # (1, B, L) — same layout as PyTorch output


# ----------------------------------------------------------------------------
# Raw (PyTorch-shaped) params + pure-JAX reference
# ----------------------------------------------------------------------------
def init_raw_params(key, signal_shape, latent_dim):
    H = HIDDEN
    ks = jax.random.split(key, 8)
    s_lstm = 1.0 / jnp.sqrt(jnp.float32(H))
    s_lin = 1.0 / jnp.sqrt(jnp.float32(2 * H))
    w_ih_f = jax.random.uniform(ks[0], (4 * H, signal_shape), jnp.float32, -s_lstm, s_lstm)
    b_ih_f = jax.random.uniform(ks[1], (4 * H,), jnp.float32, -s_lstm, s_lstm)
    b_hh_f = jax.random.uniform(ks[2], (4 * H,), jnp.float32, -s_lstm, s_lstm)
    w_ih_b = jax.random.uniform(ks[3], (4 * H, signal_shape), jnp.float32, -s_lstm, s_lstm)
    b_ih_b = jax.random.uniform(ks[4], (4 * H,), jnp.float32, -s_lstm, s_lstm)
    b_hh_b = jax.random.uniform(ks[5], (4 * H,), jnp.float32, -s_lstm, s_lstm)
    w_d = jax.random.uniform(ks[6], (latent_dim, 2 * H), jnp.float32, -s_lin, s_lin)
    b_d = jax.random.uniform(ks[7], (latent_dim,), jnp.float32, -s_lin, s_lin)
    return (w_ih_f, b_ih_f, b_hh_f, w_ih_b, b_ih_b, b_hh_b, w_d, b_d)


def encoder_reference(x, raw):
    """Pure-JAX mirror of the PyTorch math (seq_len == 1, zero initial state)."""
    (w_ih_f, b_ih_f, b_hh_f, w_ih_b, b_ih_b, b_hh_b, w_d, b_d) = raw
    H = HIDDEN
    S = w_ih_f.shape[1]
    x2d = jnp.reshape(x, (-1, S)).astype(jnp.float32)

    def direction(w_ih, b_ih, b_hh):
        g = x2d @ w_ih.T + b_ih + b_hh
        i = jax.nn.sigmoid(g[:, :H])
        gg = jnp.tanh(g[:, 2 * H:3 * H])
        o = jax.nn.sigmoid(g[:, 3 * H:])
        c = i * gg                       # f * c0 == 0
        return o * jnp.tanh(c)

    h = jnp.concatenate([direction(w_ih_f, b_ih_f, b_hh_f),
                         direction(w_ih_b, b_ih_b, b_hh_b)], axis=-1)
    return (h @ w_d.T + b_d)[None, :, :]


if __name__ == "__main__":
    signal_shape = 32
    latent_dim = 16
    batch = 8

    key = jax.random.PRNGKey(0)
    k_x, k_p = jax.random.split(key)
    x = jax.random.normal(k_x, (batch, signal_shape), jnp.float32)
    raw = init_raw_params(k_p, signal_shape, latent_dim)
    packed = pack_params(raw)
    ref = encoder_reference(x, raw)

    # Exact-semantics path (f32 everywhere) — tight check.
    out_f32 = encoder_forward(x, packed, signal_shape=signal_shape,
                              latent_dim=latent_dim, compute_dtype=jnp.float32)
    out_f32 = jax.block_until_ready(out_f32)
    assert out_f32.shape == (1, batch, latent_dim), out_f32.shape
    assert jnp.allclose(out_f32, ref, atol=1e-5, rtol=1e-5), \
        float(jnp.max(jnp.abs(out_f32 - ref)))

    # Fast path (bf16 inputs/weights, f32 accumulation + transcendentals).
    out_bf16 = encoder_forward(x, packed, signal_shape=signal_shape,
                               latent_dim=latent_dim, compute_dtype=jnp.bfloat16)
    out_bf16 = jax.block_until_ready(out_bf16)
    assert out_bf16.shape == (1, batch, latent_dim), out_bf16.shape
    assert jnp.allclose(out_bf16, ref, atol=3e-2, rtol=3e-2), \
        float(jnp.max(jnp.abs(out_bf16 - ref)))

    print("KERNEL_OK")
</pallas_src>

<mosaic_0001>
module attributes {stable_mosaic.version = 11 : i64} {
  func.func @_encoder_kernel(%arg0: i32, %arg1: memref<8x32xf32, #tpu.memory_space<vmem>>, %arg2: memref<32x768xf32, #tpu.memory_space<vmem>>, %arg3: memref<1x768xf32, #tpu.memory_space<vmem>>, %arg4: memref<128x128xf32, #tpu.memory_space<vmem>>, %arg5: memref<128x128xf32, #tpu.memory_space<vmem>>, %arg6: memref<1x128xf32, #tpu.memory_space<vmem>>, %arg7: memref<8x128xf32, #tpu.memory_space<vmem>>) attributes {dimension_semantics = [#tpu.dimension_semantics<parallel>], iteration_bounds = array<i64: 1>, scalar_prefetch = 0 : i64, scratch_operands = 0 : i64, tpu.core_type = #tpu.core_type<tc>, window_params = [{transform_indices = @transform_0, window_bounds = array<i64: 8, 32>}, {pipeline_mode = #tpu.pipeline_mode<synchronous>, transform_indices = @transform_1, window_bounds = array<i64: 32, 768>}, {pipeline_mode = #tpu.pipeline_mode<synchronous>, transform_indices = @transform_2, window_bounds = array<i64: 1, 768>}, {pipeline_mode = #tpu.pipeline_mode<synchronous>, transform_indices = @transform_3, window_bounds = array<i64: 128, 128>}, {pipeline_mode = #tpu.pipeline_mode<synchronous>, transform_indices = @transform_4, window_bounds = array<i64: 128, 128>}, {pipeline_mode = #tpu.pipeline_mode<synchronous>, transform_indices = @transform_5, window_bounds = array<i64: 1, 128>}, {transform_indices = @transform_6, window_bounds = array<i64: 8, 128>}]} {
    %c0 = arith.constant 0 : index
    %c0_0 = arith.constant 0 : index
    %0 = vector.load %arg1[%c0, %c0_0] : memref<8x32xf32, #tpu.memory_space<vmem>>, vector<8x32xf32>
    %c0_1 = arith.constant 0 : index
    %c0_2 = arith.constant 0 : index
    %1 = vector.load %arg2[%c0_1, %c0_2] : memref<32x768xf32, #tpu.memory_space<vmem>>, vector<32x768xf32>
    %cst = arith.constant dense<0.000000e+00> : vector<8x768xf32>
    %2 = tpu.matmul %0, %1, %cst {dimension_numbers = #tpu.dot_dimension_numbers<[1], [0], [0], [1], [0, 0, 1, 1], [], []>} : vector<8x32xf32>, vector<32x768xf32>, vector<8x768xf32> -> vector<8x768xf32>
    %c0_3 = arith.constant 0 : index
    %c0_4 = arith.constant 0 : index
    %3 = vector.load %arg3[%c0_3, %c0_4] : memref<1x768xf32, #tpu.memory_space<vmem>>, vector<1x768xf32>
    %4 = vector.broadcast %3 : vector<1x768xf32> to vector<8x768xf32>
    %5 = arith.addf %2, %4 : vector<8x768xf32>
    %6 = vector.extract_strided_slice %5 {offsets = [0, 0], sizes = [8, 128], strides = [1, 1]} : vector<8x768xf32> to vector<8x128xf32>
    %7 = arith.negf %6 : vector<8x128xf32>
    %8 = math.exp %7 : vector<8x128xf32>
    %cst_5 = arith.constant 1.000000e+00 : f32
    %9 = vector.broadcast %cst_5 : f32 to vector<8x128xf32>
    %10 = arith.addf %9, %8 : vector<8x128xf32>
    %11 = arith.divf %9, %10 : vector<8x128xf32>
    %12 = vector.extract_strided_slice %5 {offsets = [0, 128], sizes = [8, 128], strides = [1, 1]} : vector<8x768xf32> to vector<8x128xf32>
    %13 = math.tanh %12 : vector<8x128xf32>
    %14 = vector.extract_strided_slice %5 {offsets = [0, 256], sizes = [8, 128], strides = [1, 1]} : vector<8x768xf32> to vector<8x128xf32>
    %15 = arith.negf %14 : vector<8x128xf32>
    %16 = math.exp %15 : vector<8x128xf32>
    %cst_6 = arith.constant 1.000000e+00 : f32
    %17 = vector.broadcast %cst_6 : f32 to vector<8x128xf32>
    %18 = arith.addf %17, %16 : vector<8x128xf32>
    %19 = arith.divf %17, %18 : vector<8x128xf32>
    %20 = arith.mulf %11, %13 : vector<8x128xf32>
    %21 = math.tanh %20 : vector<8x128xf32>
    %22 = arith.mulf %19, %21 : vector<8x128xf32>
    %23 = vector.extract_strided_slice %5 {offsets = [0, 384], sizes = [8, 128], strides = [1, 1]} : vector<8x768xf32> to vector<8x128xf32>
    %24 = arith.negf %23 : vector<8x128xf32>
    %25 = math.exp %24 : vector<8x128xf32>
    %cst_7 = arith.constant 1.000000e+00 : f32
    %26 = vector.broadcast %cst_7 : f32 to vector<8x128xf32>
    %27 = arith.addf %26, %25 : vector<8x128xf32>
    %28 = arith.divf %26, %27 : vector<8x128xf32>
    %29 = vector.extract_strided_slice %5 {offsets = [0, 512], sizes = [8, 128], strides = [1, 1]} : vector<8x768xf32> to vector<8x128xf32>
    %30 = math.tanh %29 : vector<8x128xf32>
    %31 = vector.extract_strided_slice %5 {offsets = [0, 640], sizes = [8, 128], strides = [1, 1]} : vector<8x768xf32> to vector<8x128xf32>
    %32 = arith.negf %31 : vector<8x128xf32>
    %33 = math.exp %32 : vector<8x128xf32>
    %cst_8 = arith.constant 1.000000e+00 : f32
    %34 = vector.broadcast %cst_8 : f32 to vector<8x128xf32>
    %35 = arith.addf %34, %33 : vector<8x128xf32>
    %36 = arith.divf %34, %35 : vector<8x128xf32>
    %37 = arith.mulf %28, %30 : vector<8x128xf32>
    %38 = math.tanh %37 : vector<8x128xf32>
    %39 = arith.mulf %36, %38 : vector<8x128xf32>
    %c0_9 = arith.constant 0 : index
    %c0_10 = arith.constant 0 : index
    %40 = vector.load %arg4[%c0_9, %c0_10] : memref<128x128xf32, #tpu.memory_space<vmem>>, vector<128x128xf32>
    %cst_11 = arith.constant dense<0.000000e+00> : vector<8x128xf32>
    %41 = tpu.matmul %22, %40, %cst_11 {dimension_numbers = #tpu.dot_dimension_numbers<[1], [0], [0], [1], [0, 0, 1, 1], [], []>} : vector<8x128xf32>, vector<128x128xf32>, vector<8x128xf32> -> vector<8x128xf32>
    %c0_12 = arith.constant 0 : index
    %c0_13 = arith.constant 0 : index
    %42 = vector.load %arg5[%c0_12, %c0_13] : memref<128x128xf32, #tpu.memory_space<vmem>>, vector<128x128xf32>
    %cst_14 = arith.constant dense<0.000000e+00> : vector<8x128xf32>
    %43 = tpu.matmul %39, %42, %cst_14 {dimension_numbers = #tpu.dot_dimension_numbers<[1], [0], [0], [1], [0, 0, 1, 1], [], []>} : vector<8x128xf32>, vector<128x128xf32>, vector<8x128xf32> -> vector<8x128xf32>
    %44 = arith.addf %41, %43 : vector<8x128xf32>
    %c0_15 = arith.constant 0 : index
    %c0_16 = arith.constant 0 : index
    %45 = vector.load %arg6[%c0_15, %c0_16] : memref<1x128xf32, #tpu.memory_space<vmem>>, vector<1x128xf32>
    %46 = vector.broadcast %45 : vector<1x128xf32> to vector<8x128xf32>
    %47 = arith.addf %44, %46 : vector<8x128xf32>
    %c0_17 = arith.constant 0 : index
    %c0_18 = arith.constant 0 : index
    %48 = vector.load %arg7[%c0_17, %c0_18] : memref<8x128xf32, #tpu.memory_space<vmem>>, vector<8x128xf32>
    tpu.vector_store %arg7[%c0_17, %c0_18], %47 {strides = array<i32>} : memref<8x128xf32, #tpu.memory_space<vmem>>, vector<8x128xf32>,
    return
  }
  func.func @transform_0(%arg0: i32) -> (i32, i32) {
    %c0_i32 = arith.constant 0 : i32
    %c0_i32_0 = arith.constant 0 : i32
    return %arg0, %c0_i32 : i32, i32
  }
  func.func @transform_1(%arg0: i32) -> (i32, i32) {
    %c0_i32 = arith.constant 0 : i32
    %c0_i32_0 = arith.constant 0 : i32
    %c0_i32_1 = arith.constant 0 : i32
    return %c0_i32, %c0_i32_0 : i32, i32
  }
  func.func @transform_2(%arg0: i32) -> (i32, i32) {
    %c0_i32 = arith.constant 0 : i32
    %c0_i32_0 = arith.constant 0 : i32
    %c0_i32_1 = arith.constant 0 : i32
    return %c0_i32, %c0_i32_0 : i32, i32
  }
  func.func @transform_3(%arg0: i32) -> (i32, i32) {
    %c0_i32 = arith.constant 0 : i32
    %c0_i32_0 = arith.constant 0 : i32
    %c0_i32_1 = arith.constant 0 : i32
    return %c0_i32, %c0_i32_0 : i32, i32
  }
  func.func @transform_4(%arg0: i32) -> (i32, i32) {
    %c0_i32 = arith.constant 0 : i32
    %c0_i32_0 = arith.constant 0 : i32
    %c0_i32_1 = arith.constant 0 : i32
    return %c0_i32, %c0_i32_0 : i32, i32
  }
  func.func @transform_5(%arg0: i32) -> (i32, i32) {
    %c0_i32 = arith.constant 0 : i32
    %c0_i32_0 = arith.constant 0 : i32
    %c0_i32_1 = arith.constant 0 : i32
    return %c0_i32, %c0_i32_0 : i32, i32
  }
  func.func @transform_6(%arg0: i32) -> (i32, i32) {
    %c0_i32 = arith.constant 0 : i32
    %c0_i32_0 = arith.constant 0 : i32
    return %arg0, %c0_i32 : i32, i32
  }
}

</mosaic_0001>

<bundles_post_ra>
// kernel: tpu_custom_call.1
= control target key start
LH: loop header
LB: loop body
LE: loop exit
PB: predicated region body
PF: predicated region fallthrough
CT: control target
= control target key end

     0   :  { %11 = vsyncpa [#allocation3], 0  ;;  %s1053_s0 = inlined_call_operand.hbm [shape: f32[8,32], index: 0, kind: input, shape index: {}]   ;;  %s1054_s1 = inlined_call_operand.hbm [shape: f32[32,768], index: 1, kind: input, shape index: {}]   ;;  %s1055_s2 = inlined_call_operand.vmem [shape: f32[1,768], index: 2, kind: input, shape index: {}]   ;;  %s1056_s3 = inlined_call_operand.hbm [shape: f32[128,128], index: 3, kind: input, shape index: {}]   ;;  %s1057_s4 = inlined_call_operand.hbm [shape: f32[128,128], index: 4, kind: input, shape index: {}]   ;;  %s1058_s5 = inlined_call_operand.vmem [shape: f32[1,128], index: 5, kind: input, shape index: {}]   ;;  %s1059_s6 = inlined_call_operand.hbm [shape: f32[8,128], index: 6, kind: output, shape index: {}]  }
   0x1   :  { %12 = vsyncpa [#allocation6], 0 }
   0x2   :  { %13 = vsyncpa [#allocation9], 0 }
   0x3   :  { %14 = vsyncpa [#allocation4], 0  ;;  %s919_s21 = smov [#allocation5]   ;;  %s801_s25 = scalar_lea.hbm %s1054_s1, 3072 }
   0x4   :  { %s30_s22 = sshll.u32 %s919_s21, 4  ;;  %p802_p0 = scmp.ne.s32.totalorder %s1054_s1, %s801_s25  ;;  %s31_s22 = int_to_ptr.vmem [resolvable:$true] %s30_s22 }
   0x5   :  { %p805_p1 = scmp.lt.u32.totalorder %s801_s25, %s1054_s1 }
   0x7   :  { %p807_p2 = pnand %p805_p1, %p802_p0 }
   0x9   :  { %810 = shalt.err (!%p807_p2)
}
   0xa   :  { %s811_s30 = scalar_lea.vmem %s31_s22, 3072  ;;  %p816_p4 = scmp.lt.s32.totalorder %s31_s22, %s31_s22 }
   0xb   :  { %p812_p3 = scmp.ne.s32.totalorder %s31_s22, %s811_s30  ;;  %p817_p5 = scmp.lt.s32.totalorder %s811_s30, %s811_s30 }
   0xd   :  { %p818_p6 = por %p817_p5, %p816_p4 }
   0xf   :  { %p819_p7 = pnand %p818_p6, %p812_p3 }
  0x11   :  { %822 = shalt.err (!%p819_p7)
}
  0x12   :  { %s920_s7 = smov 768   ;;  %s921_s8 = smov 48  }
  0x13   :  { %36 = dma.hbm_to_vmem [thread:$0]  %s1054_s1, 3072, %s31_s22, [#allocation6], %s920_s7, %s920_s7, %s921_s8  }
  0x14   :  { %s922_s11 = smov [#allocation2]   ;;  %s923_s13 = smov [#allocation7]  }
  0x15   :  { %s21_s12 = sshll.u32 %s922_s11, 4  ;;  %s44_s14 = sshll.u32 %s923_s13, 4  ;;  %s22_s12 = int_to_ptr.vmem [resolvable:$true] %s21_s12  ;;  %s45_s14 = int_to_ptr.vmem [resolvable:$true] %s44_s14 }
  0x16   :  { %s823_s17 = scalar_lea.hbm %s1053_s0, 128 }
  0x17   :  { %p824_p8 = scmp.ne.s32.totalorder %s1053_s0, %s823_s17  ;;  %p827_p9 = scmp.lt.u32.totalorder %s823_s17, %s1053_s0 }
  0x19   :  { %p829_p10 = pnand %p827_p9, %p824_p8 }
  0x1b   :  { %832 = shalt.err (!%p829_p10)
}
  0x1c   :  { %s833_s1 = scalar_lea.vmem %s22_s12, 128  ;;  %p838_p12 = scmp.lt.s32.totalorder %s22_s12, %s22_s12 }
  0x1d   :  { %p834_p11 = scmp.ne.s32.totalorder %s22_s12, %s833_s1  ;;  %p839_p13 = scmp.lt.s32.totalorder %s833_s1, %s833_s1 }
  0x1f   :  { %p840_p0 = por %p839_p13, %p838_p12 }
  0x21   :  { %p841_p1 = pnand %p840_p0, %p834_p11 }
  0x23   :  { %844 = shalt.err (!%p841_p1)
}
  0x24   :  { %24 = dma.hbm_to_vmem [thread:$0]  %s1053_s0, 128, %s22_s12, [#allocation3]  }
  0x25   :  { %s845_s26 = scalar_lea.hbm %s1056_s3, 2048 }
  0x26   :  { %p846_p2 = scmp.ne.s32.totalorder %s1056_s3, %s845_s26  ;;  %p849_p3 = scmp.lt.u32.totalorder %s845_s26, %s1056_s3 }
  0x28   :  { %p851_p4 = pnand %p849_p3, %p846_p2 }
  0x2a   :  { %854 = shalt.err (!%p851_p4)
}
  0x2b   :  { %s855_s7 = scalar_lea.vmem %s45_s14, 2048  ;;  %p860_p6 = scmp.lt.s32.totalorder %s45_s14, %s45_s14 }
  0x2c   :  { %p856_p5 = scmp.ne.s32.totalorder %s45_s14, %s855_s7  ;;  %p861_p7 = scmp.lt.s32.totalorder %s855_s7, %s855_s7 }
  0x2e   :  { %p862_p8 = por %p861_p7, %p860_p6 }
  0x30   :  { %p863_p9 = pnand %p862_p8, %p856_p5 }
  0x32   :  { %866 = shalt.err (!%p863_p9)
}
  0x33   :  { %s924_s0 = smov 128   ;;  %s925_s8 = smov 8  }
  0x34   :  { %50 = dma.hbm_to_vmem [thread:$0]  %s1056_s3, 2048, %s45_s14, [#allocation6], %s924_s0, %s924_s0, %s925_s8  }
  0x35   :  { %s926_s11 = smov [#allocation8]   ;;  %s867_s16 = scalar_lea.hbm %s1057_s4, 2048 }
  0x36   :  { %s56_s12 = sshll.u32 %s926_s11, 4  ;;  %p868_p10 = scmp.ne.s32.totalorder %s1057_s4, %s867_s16  ;;  %s57_s12 = int_to_ptr.vmem [resolvable:$true] %s56_s12 }
  0x37   :  { %p871_p11 = scmp.lt.u32.totalorder %s867_s16, %s1057_s4 }
  0x39   :  { %p873_p12 = pnand %p871_p11, %p868_p10 }
  0x3b   :  { %876 = shalt.err (!%p873_p12)
}
  0x3c   :  { %s877_s21 = scalar_lea.vmem %s57_s12, 2048  ;;  %p882_p0 = scmp.lt.s32.totalorder %s57_s12, %s57_s12 }
  0x3d   :  { %p878_p13 = scmp.ne.s32.totalorder %s57_s12, %s877_s21  ;;  %p883_p1 = scmp.lt.s32.totalorder %s877_s21, %s877_s21 }
  0x3f   :  { %p884_p2 = por %p883_p1, %p882_p0 }
  0x41   :  { %p885_p3 = pnand %p884_p2, %p878_p13 }
  0x43   :  { %888 = shalt.err (!%p885_p3)
}
  0x44   :  { %62 = dma.hbm_to_vmem [thread:$0]  %s1057_s4, 2048, %s57_s12, [#allocation9], %s924_s0, %s924_s0, %s925_s8  }
  0x45   :  { %911 = dma.done.wait [#allocation3], 128  }
  0x46   :  { %912 = vsyncadd [#allocation3], 4294967168 }
  0x47   :  { %913 = dma.done.wait [#allocation6], 5120  }
  0x48   :  { %914 = vsyncadd [#allocation6], 4294962176 }
  0x49   :  { %915 = dma.done.wait [#allocation9], 2048  }
  0x4a   :  { %916 = vsyncadd [#allocation9], 4294965248  ;;  %v927_v0 = vmov 0.0   ;;  %v79_v1 = vld [vmem:[#allocation5 + $0x8] sm:$0xff]  ;;  %v85_v2 = vld [vmem:[#allocation5 + $0x38] sm:$0xff]  ;;  %vm134_vm0 = vcmask 261120  }
  0x4b   :  { %202 = vmatprep.mubr.f32.mxu0 %v927_v0  ;;  %273 = vmatprep.mubr.f32.mxu1 %v927_v0  ;;  %v81_v3 = vld [vmem:[#allocation5 + $0x18] sm:$0xff]  ;;  %v693_v4 = vpack.c.bf16 %v85_v2, %v79_v1  ;;  %v87_v5 = vld [vmem:[#allocation5 + $0x48] sm:$0xff]  ;;  %v78_v6 = vld [vmem:[#allocation5] sm:$0xff]  ;;  %v928_v43 = vmov 0.0|0.0   ;;  %vm929_vm1 = vmmov 0   ;;  %s930_s23 = smov [#allocation10]  }
  0x4c   :  { %v84_v7 = vld [vmem:[#allocation5 + $0x30] sm:$0xff]  ;;  %v701_v8 = vpack.c.bf16 %v87_v5, %v81_v3  ;;  %v86_v11 = vld [vmem:[#allocation5 + $0x40] sm:$0xff]  ;;  %v91_v12 = vld [vmem:[#allocation5 + $0x68] sm:$0xff]  ;;  %s570_s24 = sshll.u32 %s930_s23, 4  ;;  %s571_s24 = int_to_ptr.vmem [resolvable:$true] %s570_s24 }
  0x4d   :  { %v695_v9 = vpack.c.bf16 %v84_v7, %v78_v6  ;;  %v80_v10 = vld [vmem:[#allocation5 + $0x10] sm:$0xff]  ;;  %694 = vmatprep.subr.bf16.mxu0 %v693_v4  ;;  %v97_v14 = vld [vmem:[#allocation5 + $0x98] sm:$0xff]  ;;  %v99_v16 = vld [vmem:[#allocation5 + $0xa8] sm:$0xff]  ;;  %s889_s25 = scalar_lea.vmem %s571_s24, 128  ;;  %p894_p5 = scmp.lt.s32.totalorder %s571_s24, %s571_s24 }
  0x4e   :  { %v703_v13 = vpack.c.bf16 %v86_v11, %v80_v10  ;;  %v93_v15 = vld [vmem:[#allocation5 + $0x78] sm:$0xff]  ;;  %702 = vmatprep.subr.bf16.mxu1 %v701_v8  ;;  %v697_v17 = vpack.c.bf16 %v97_v14, %v91_v12  ;;  %v90_v19 = vld [vmem:[#allocation5 + $0x60] sm:$0xff]  ;;  %v96_v20 = vld [vmem:[#allocation5 + $0x90] sm:$0xff]  ;;  %p890_p4 = scmp.ne.s32.totalorder %s571_s24, %s889_s25  ;;  %p895_p6 = scmp.lt.s32.totalorder %s889_s25, %s889_s25 }
  0x4f   :  { %696 = vmatpush1.bf16.msra.mxu0 %v695_v9  ;;  %v705_v18 = vpack.c.bf16 %v99_v16, %v93_v15  ;;  %v92_v21 = vld [vmem:[#allocation5 + $0x70] sm:$0xff]  ;;  %v699_v22 = vpack.c.bf16 %v96_v20, %v90_v19  ;;  %v98_v23 = vld [vmem:[#allocation5 + $0xa0] sm:$0xff]  ;;  %v83_v24 = vld [vmem:[#allocation5 + $0x28] sm:$0xff] }
  0x50   :  { %704 = vmatpush1.bf16.msra.mxu1 %v703_v13  ;;  %698 = vmatprep.subr.bf16.mxu0 %v697_v17  ;;  %v707_v25 = vpack.c.bf16 %v98_v23, %v92_v21  ;;  %v89_v26 = vld [vmem:[#allocation5 + $0x58] sm:$0xff]  ;;  %v82_v27 = vld [vmem:[#allocation5 + $0x20] sm:$0xff]  ;;  %v88_v28 = vld [vmem:[#allocation5 + $0x50] sm:$0xff]  ;;  %p896_p7 = por %p895_p6, %p894_p5 }
  0x51   :  { %706 = vmatprep.subr.bf16.mxu1 %v705_v18  ;;  %v709_v29 = vpack.c.bf16 %v89_v26, %v83_v24  ;;  %v95_v30 = vld [vmem:[#allocation5 + $0x88] sm:$0xff]  ;;  %v101_v31 = vld [vmem:[#allocation5 + $0xb8] sm:$0xff]  ;;  %v711_v33 = vpack.c.bf16 %v88_v28, %v82_v27  ;;  %v94_v35 = vld [vmem:[#allocation5 + $0x80] sm:$0xff]  ;;  %v104_v24 = vlaneseq }
  0x52   :  { %v77_v32 = vld [vmem:[#allocation2] sm:$0xff]  ;;  %v713_v34 = vpack.c.bf16 %v101_v31, %v95_v30  ;;  %v100_v36 = vld [vmem:[#allocation5 + $0xb0] sm:$0xff]  ;;  %v383_v38 = vld [vmem:[#allocation7] sm:$0xff]  ;;  %p897_p8 = pnand %p896_p7, %p890_p4 }
  0x53   :  { %700 = vmatpush1.bf16.msra.mxu0 %v699_v22  ;;  %v715_v37 = vpack.c.bf16 %v100_v36, %v94_v35  ;;  %v384_v39 = vld [vmem:[#allocation7 + $0x8] sm:$0xff]  ;;  %v399_v41 = vld [vmem:[#allocation8] sm:$0xff]  ;;  %v385_v45 = vld [vmem:[#allocation7 + $0x10] sm:$0xff] }
  0x54   :  { %708 = vmatpush1.bf16.msra.mxu1 %v707_v25  ;;  %710 = vmatprep.subr.bf16.mxu0 %v709_v29  ;;  %v742_v40 = vpack.c.bf16 %v384_v39, %v383_v38  ;;  %v400_v42 = vld [vmem:[#allocation8 + $0x8] sm:$0xff]  ;;  %v386_v46 = vld [vmem:[#allocation7 + $0x18] sm:$0xff]  ;;  %v401_v48 = vld [vmem:[#allocation8 + $0x10] sm:$0xff]  ;;  %v105_v25 = vshrl.u32 %v104_v24, 7 }
  0x55   :  { %717 = vmatprep.subr.bf16.mxu1 %v928_v43  ;;  %v718_v44 = vpack.c.bf16 %v400_v42, %v399_v41  ;;  %v745_v47 = vpack.c.bf16 %v386_v46, %v385_v45  ;;  %v402_v49 = vld [vmem:[#allocation8 + $0x18] sm:$0xff]  ;;  %v387_v51 = vld [vmem:[#allocation7 + $0x20] sm:$0xff]  ;;  %v388_v52 = vld [vmem:[#allocation7 + $0x28] sm:$0xff] }
  0x56   :  { %581 = vmatmul.mubr.msk.f32.vlgmr.msra.gmra.mrb[0].mxu0 %vm134_vm0, %v77_v32  ;;  %v721_v50 = vpack.c.bf16 %v402_v49, %v401_v48  ;;  %v748_v53 = vpack.c.bf16 %v388_v52, %v387_v51  ;;  %v403_v54 = vld [vmem:[#allocation8 + $0x20] sm:$0xff]  ;;  %v404_v55 = vld [vmem:[#allocation8 + $0x28] sm:$0xff]  ;;  %v389_v57 = vld [vmem:[#allocation7 + $0x30] sm:$0xff]  ;;  %v106_v26 = vsub.s32 0, %v105_v25  ;;  %v118_v28 = vsub.s32 3, %v105_v25 }
  0x57   :  { %582 = vmatmul.mubr.msk.f32.vlgmr.msra.gmra.mrb[0].mxu1 %vm134_vm0, %v77_v32  ;;  %712 = vmatpush1.bf16.msra.mxu0 %v711_v33  ;;  %v724_v56 = vpack.c.bf16 %v404_v55, %v403_v54  ;;  %v390_v58 = vld [vmem:[#allocation7 + $0x38] sm:$0xff]  ;;  %v405_v60 = vld [vmem:[#allocation8 + $0x30] sm:$0xff]  ;;  %v391_v63 = vld [vmem:[#allocation7 + $0x40] sm:$0xff]  ;;  %v114_v29 = vsub.s32 2, %v105_v25  ;;  %v110_v41 = vsub.s32 1, %v105_v25 }
  0x58   :  { %714 = vmatprep.subr.bf16.mxu0 %v713_v34  ;;  %344 = vmatprep.mubr.f32.mxu0 %v927_v0  ;;  %v751_v59 = vpack.c.bf16 %v390_v58, %v389_v57  ;;  %v406_v61 = vld [vmem:[#allocation8 + $0x38] sm:$0xff]  ;;  %v392_v1 = vld [vmem:[#allocation7 + $0x48] sm:$0xff]  ;;  %v407_v3 = vld [vmem:[#allocation8 + $0x40] sm:$0xff] }
  0x59   :  { %719 = vmatpush3.bf16.msra.mxu1 %v718_v44  ;;  %v727_v62 = vpack.c.bf16 %v406_v61, %v405_v60  ;;  %v754_v2 = vpack.c.bf16 %v392_v1, %v391_v63  ;;  %v408_v4 = vld [vmem:[#allocation8 + $0x48] sm:$0xff]  ;;  %v393_v6 = vld [vmem:[#allocation7 + $0x50] sm:$0xff]  ;;  %v394_v7 = vld [vmem:[#allocation7 + $0x58] sm:$0xff]  ;;  %655 = vmatprep.mubr.msk.f32.mxu1 %vm929_vm1, %v927_v0  ;;  %v122_v44 = vsub.s32 4, %v105_v25 }
  0x5a   :  { %720 = vmatprep.subr.bf16.mxu1 %v928_v43  ;;  %v730_v5 = vpack.c.bf16 %v408_v4, %v407_v3  ;;  %v757_v8 = vpack.c.bf16 %v394_v7, %v393_v6  ;;  %v409_v9 = vld [vmem:[#allocation8 + $0x50] sm:$0xff]  ;;  %v410_v10 = vld [vmem:[#allocation8 + $0x58] sm:$0xff]  ;;  %v395_v12 = vld [vmem:[#allocation7 + $0x60] sm:$0xff] }
  0x5b   :  { %716 = vmatpush1.bf16.msra.mxu0 %v715_v37  ;;  %v733_v11 = vpack.c.bf16 %v410_v10, %v409_v9  ;;  %v396_v13 = vld [vmem:[#allocation7 + $0x68] sm:$0xff]  ;;  %v411_v14 = vld [vmem:[#allocation8 + $0x60] sm:$0xff]  ;;  %v397_v18 = vld [vmem:[#allocation7 + $0x70] sm:$0xff]  ;;  %v126_v37 = vsub.s32 5, %v105_v25 }
  0x5c   :  { %741 = vmatprep.subr.bf16.mxu0 %v928_v43  ;;  %v760_v15 = vpack.c.bf16 %v396_v13, %v395_v12  ;;  %v412_v16 = vld [vmem:[#allocation8 + $0x68] sm:$0xff]  ;;  %v398_v19 = vld [vmem:[#allocation7 + $0x78] sm:$0xff]  ;;  %v413_v20 = vld [vmem:[#allocation8 + $0x70] sm:$0xff] }
  0x5d   :  { %722 = vmatpush3.bf16.msra.mxu1 %v721_v50  ;;  %v736_v17 = vpack.c.bf16 %v412_v16, %v411_v14  ;;  %v414_v21 = vld [vmem:[#allocation8 + $0x78] sm:$0xff]  ;;  %v763_v22 = vpack.c.bf16 %v398_v19, %v397_v18 }
  0x5e   :  { %583 = vmatmul.mubr.msk.f32.vlgmr.msra.gmra.mrb[2].mxu0 %vm134_vm0, %v77_v32  ;;  %723 = vmatprep.subr.bf16.mxu1 %v928_v43  ;;  %v739_v23 = vpack.c.bf16 %v414_v21, %v413_v20  ;;  %v102_v27 = vld [vmem:[%s1055_s2] sm:$0x3f] }
  0x5f   :  { %743 = vmatpush3.bf16.msra.mxu0 %v742_v40  ;;  %690 = vmatprep.mubr.msk.f32.mxu0 %vm929_vm1, %v927_v0  ;;  %v107_v0 = vrot.slane %v102_v27, %v106_v26  ;;  %v119_v30 = vrot.slane %v102_v27, %v118_v28  ;;  %v115_v32 = vrot.slane %v102_v27, %v114_v29  ;;  %v588_v14 = vld [vmem:[%s1058_s5] ss:$0 sm:$0xff] }
  0x60   :  { %744 = vmatprep.subr.bf16.mxu0 %v928_v43  ;;  %v123_v50 = vrot.slane %v102_v27, %v122_v44 }
  0x61   :  { %725 = vmatpush3.bf16.msra.mxu1 %v724_v56 }
  0x62   :  { %726 = vmatprep.subr.bf16.mxu1 %v928_v43 }
  0x63   :  { %746 = vmatpush3.bf16.msra.mxu0 %v745_v47  ;;  %v111_v47 = vrot.slane %v102_v27, %v110_v41 }
  0x64   :  { %747 = vmatprep.subr.bf16.mxu0 %v928_v43 }
  0x65   :  { %728 = vmatpush3.bf16.msra.mxu1 %v727_v62 }
  0x66   :  { %729 = vmatprep.subr.bf16.mxu1 %v928_v43 }
  0x67   :  { %749 = vmatpush3.bf16.msra.mxu0 %v748_v53 }
  0x68   :  { %750 = vmatprep.subr.bf16.mxu0 %v928_v43 }
  0x69   :  { %731 = vmatpush3.bf16.msra.mxu1 %v730_v5 }
  0x6a   :  { %732 = vmatprep.subr.bf16.mxu1 %v928_v43 }
  0x6b   :  { %752 = vmatpush3.bf16.msra.mxu0 %v751_v59 }
  0x6c   :  { %753 = vmatprep.subr.bf16.mxu0 %v928_v43 }
  0x6d   :  { %734 = vmatpush3.bf16.msra.mxu1 %v733_v11 }
  0x6e   :  { %735 = vmatprep.subr.bf16.mxu1 %v928_v43 }
  0x6f   :  { %755 = vmatpush3.bf16.msra.mxu0 %v754_v2 }
  0x70   :  { %756 = vmatprep.subr.bf16.mxu0 %v928_v43 }
  0x71   :  { %737 = vmatpush3.bf16.msra.mxu1 %v736_v17 }
  0x72   :  { %738 = vmatprep.subr.bf16.mxu1 %v928_v43 }
  0x73   :  { %758 = vmatpush3.bf16.msra.mxu0 %v757_v8 }
  0x74   :  { %759 = vmatprep.subr.bf16.mxu0 %v928_v43 }
  0x75   :  { %740 = vmatpush3.bf16.msra.mxu1 %v739_v23 }
  0x77   :  { %761 = vmatpush3.bf16.msra.mxu0 %v760_v15 }
  0x78   :  { %762 = vmatprep.subr.bf16.mxu0 %v928_v43  ;;  %v127_v43 = vrot.slane %v102_v27, %v126_v37 }
  0x7b   :  { %764 = vmatpush3.bf16.msra.mxu0 %v763_v22 }
 0x129   :  { %v204_v31 = vpop.f32.mrb[0].mxu0 }
 0x12a   :  { %v205_v33 = vadd.f32 %v204_v31, %v107_v0  ;;  %v275_v34 = vpop.f32.mrb[0].mxu1  ;;  %v206_v35 = vpop.f32.mrb[1].mxu0 }
 0x12b   :  { %v277_v36 = vpop.f32.mrb[1].mxu1  ;;  %v276_v40 = vadd.f32 %v275_v34, %v115_v32  ;;  %v207_v52 = vadd.f32 %v206_v35, %v111_v47 }
 0x12c   :  { %v584_v38 = vmul.f32 -1.442695, %v205_v33  ;;  %v278_v39 = vadd.f32 %v277_v36, %v119_v30 }
 0x12d   :  { %v585_v45 = vmul.f32 -1.442695, %v276_v40 }
 0x12e   :  { %777 = vpow2.f32 %v584_v38  ;;  %v586_v42 = vmul.f32 -1.442695, %v278_v39 }
 0x130   :  { %779 = vpow2.f32 %v586_v42 }
 0x131   :  { %v346_v46 = vpop.f32.mrb[2].mxu0  ;;  %781 = vpow2.f32 %v585_v45 }
 0x132   :  { %v348_v48 = vpop.f32.mrb[3].mxu0  ;;  %v347_v54 = vadd.f32 %v346_v46, %v123_v50 }
 0x133   :  { %v349_v49 = vadd.f32 %v348_v48, %v127_v43 }
 0x135   :  { %v587_v51 = vmul.f32 -1.442695, %v349_v49 }
 0x137   :  { %783 = vpow2.f32 %v587_v51 }
 0x138   :  { %v778_v53 = vpop.eup %777  ;;  %785 = vtanh.f32 %v207_v52 }
 0x139   :  { %v354_v55 = vadd.f32 1.0, %v778_v53 }
 0x13a   :  { %v780_v56 = vpop.eup %779 }
 0x13b   :  { %787 = vrcp.f32 %v354_v55  ;;  %v370_v57 = vadd.f32 1.0, %v780_v56  ;;  %v782_v58 = vpop.eup %781 }
 0x13c   :  { %789 = vtanh.f32 %v347_v54  ;;  %v361_v60 = vadd.f32 1.0, %v782_v58 }
 0x13d   :  { %791 = vrcp.f32 %v370_v57 }
 0x13e   :  { %793 = vrcp.f32 %v361_v60 }
 0x141   :  { %v784_v59 = vpop.eup %783 }
 0x142   :  { %v377_v61 = vadd.f32 1.0, %v784_v59  ;;  %v786_v62 = vpop.eup %785 }
 0x144   :  { %795 = vrcp.f32 %v377_v61 }
 0x145   :  { %v788_v63 = vpop.eup %787 }
 0x146   :  { %v790_v1 = vpop.eup %789  ;;  %v364_v2 = vmul.f32 %v788_v63, %v786_v62 }
 0x147   :  { %v792_v3 = vpop.eup %791 }
 0x148   :  { %797 = vtanh.f32 %v364_v2  ;;  %v380_v4 = vmul.f32 %v792_v3, %v790_v1  ;;  %v794_v5 = vpop.eup %793 }
 0x14a   :  { %799 = vtanh.f32 %v380_v4 }
 0x14e   :  { %v796_v6 = vpop.eup %795 }
 0x152   :  { %v798_v7 = vpop.eup %797 }
 0x153   :  { %v366_v8 = vmul.f32 %v798_v7, %v794_v5 }
 0x154   :  { %v800_v9 = vpop.eup %799 }
 0x155   :  { %691 = vmatmul.mubr.f32.vlgmr.msra.gmra.mrb[4].mxu0 %v366_v8  ;;  %v382_v10 = vmul.f32 %v800_v9, %v796_v6 }
 0x157   :  { %656 = vmatmul.mubr.f32.vlgmr.msra.gmra.mrb[2].mxu1 %v382_v10 }
 0x228   :  { %v551_v11 = vpop.f32.mrb[4].mxu0 }
 0x229   :  { %v692_v12 = vpop.f32.mrb[5].mxu0 }
 0x22a   :  { %v481_v13 = vpop.f32.mrb[2].mxu1 }
 0x22b   :  { %v552_v15 = vadd.f32 %v551_v11, %v481_v13  ;;  %v657_v16 = vpop.f32.mrb[3].mxu1 }
 0x22d   :  { %v562_v17 = vadd.f32 %v588_v14, %v552_v15 }
 0x22f   :  { %563 = vst [vmem:[#allocation10] sm:$0xff] %v562_v17 }
 0x230   :  { %900 = shalt.err (!%p897_p8)
}
 0x231   :  { %s901_s28 = scalar_lea.hbm %s1059_s6, 128 }
 0x232   :  { %p902_p9 = scmp.ne.s32.totalorder %s1059_s6, %s901_s28  ;;  %p905_p10 = scmp.lt.u32.totalorder %s901_s28, %s1059_s6 }
 0x234   :  { %p907_p11 = pnand %p905_p10, %p902_p9 }
 0x236   :  { %910 = shalt.err (!%p907_p11)
}
 0x237   :  { %573 = dma.vmem_to_hbm [thread:$0]  %s571_s24, 128, %s1059_s6, [#allocation4]  }
 0x238   :  { %917 = dma.done.wait [#allocation4], 128  }
 0x239   :  { %918 = vsyncadd [#allocation4], 4294967168 }
 0x23a   :  { %577 = vsyncpa [#allocation3], 1 }
 0x23b   :  { %578 = vsyncpa [#allocation6], 1 }
 0x23c   :  { %579 = vsyncpa [#allocation9], 1 }
 0x23d   :  { %580 = vsyncpa [#allocation4], 1 }

</bundles_post_ra>
